<compile_context>
chip_gen: v5e
topology: v5e:2x2
jax: 0.10.0
libtpu: 0.0.40
codegen_flags: <defaults>
</compile_context>

<pallas_src>
import functools

import jax
import jax.numpy as jnp
from jax.experimental import pallas as pl
from jax.experimental.pallas import tpu as pltpu

_MIB = 1024 * 1024


def _round_up(x, m):
    return ((x + m - 1) // m) * m


def _detect_tpu():
    """Returns (vmem_capacity_bytes, is_v7x, detected).

    Conservative fallback when the hardware query is unavailable: small-VMEM
    sizing and a single TensorCore (no CORE_PARALLEL / second partial).
    """
    try:
        info = pltpu.get_tpu_info()
        vmem = int(info.vmem_capacity_bytes)
        return vmem, vmem <= 64 * _MIB, True
    except Exception:  # pragma: no cover
        return 64 * _MIB, False, False


def _prob_loss_kernel(stu_ref, tch_ref, out_ref, acc_ref, *, approx_recip):
    """One (tile_b, C) tile: accumulate per-row KL(softmax(tch) || softmax(stu))."""
    i = pl.program_id(1)

    # Zero the per-row accumulator at the start of each outer (per-partial) pass.
    @pl.when(i == 0)
    def _():
        acc_ref[...] = jnp.zeros_like(acc_ref)

    stu = stu_ref[...].astype(jnp.float32)
    tch = tch_ref[...].astype(jnp.float32)

    # Numerically stable shifted logits.  The shift cancels algebraically in the
    # KL identity below; it only guards exp() against overflow.
    stu_shift = stu - jnp.max(stu, axis=-1, keepdims=True)
    tch_shift = tch - jnp.max(tch, axis=-1, keepdims=True)
    # TODO(synk): on v6e/v7x these two maxes could run on packed bf16 vregs to
    #             halve the remaining XLU work; kept f32 for a single v5e-safe path.

    tch_exp = jnp.exp(tch_shift)
    stu_exp = jnp.exp(stu_shift)

    # Route the three lane-wise row sums through the otherwise-idle MXU
    # (x @ ones(C, 1) == row sum).  At C=128 the XLU slot, not HBM/MXU, is what
    # saturates first if these stay as cross-lane jnp.sum reductions.
    ones_c = jnp.ones((tch.shape[-1], 1), jnp.float32)
    tch_sum = jnp.dot(tch_exp, ones_c, preferred_element_type=jnp.float32)
    stu_sum = jnp.dot(stu_exp, ones_c, preferred_element_type=jnp.float32)
    row_dot = jnp.dot(tch_exp * (tch_shift - stu_shift), ones_c,
                      preferred_element_type=jnp.float32)

    # Row-wise KL(softmax(tch) || softmax(stu)) using sum_c p_t == 1:
    #   sum_c p_t*(log p_t - log p_s)
    #     = [sum_c e_t*(tch_shift - stu_shift)] / tch_sum + log(stu_sum / tch_sum)
    # One reciprocal per row (EUP), reused for both terms (fuses the two logs).
    inv_tch = pl.reciprocal(tch_sum, approx=approx_recip)
    row_kl = row_dot * inv_tch + jnp.log(stu_sum * inv_tch)

    # Per-row accumulation only (cheap VPU adds); cross-row reduce deferred.
    acc_ref[...] += row_kl

    # Epilogue: single cross-row reduce, one lane-dense store per outer index.
    @pl.when(i == pl.num_programs(1) - 1)
    def _():
        out_ref[...] = jnp.broadcast_to(jnp.sum(acc_ref[...]), out_ref.shape)


def probability_loss(logits_stu, logits_tch, *, tile_b=None, num_partials=None,
                     approx_reciprocal=False):
    """Pallas equivalent of ProbabilityLoss.forward (world_size == 1).

    bf16 logits are accepted as-is (cast to f32 inside the kernel), halving HBM
    traffic — recommended especially on v5e, whose HBM bandwidth is lowest.
    approx_reciprocal=False (exact) is the default so the result stays within
    tight parity of the torch reference even for large batches.
    """
    assert logits_stu.shape == logits_tch.shape
    assert logits_stu.ndim == 2
    B, C = logits_stu.shape

    in_itemsize = max(jnp.dtype(logits_stu.dtype).itemsize,
                      jnp.dtype(logits_tch.dtype).itemsize)

    vmem_capacity, is_v7x, detected = _detect_tpu()

    # --- generation-aware VMEM budgets ---------------------------------------
    #   v5e/v6e (128 MiB physical): big tiles (~3 MiB per input slab), cap ~96 MiB.
    #   v7x     (64 MiB per TC)   : ~1.5 MiB per input slab, cap 48 MiB.
    if is_v7x:
        per_buf_budget = 3 * _MIB // 2
        vmem_cap = 48 * _MIB
    else:
        per_buf_budget = 3 * _MIB
        vmem_cap = min(96 * _MIB, max(32 * _MIB, (vmem_capacity * 3) // 4))

    # All (tile_b, C) f32 temporaries are live in VMEM at once (single block
    # over C); clamp tile_b against that and fail loudly for vocab-scale C.
    n_f32_tmp = 8  # stu, tch, shifts, exps, product + slack (conservative)
    bytes_per_row = C * (2 * 2 * in_itemsize + n_f32_tmp * 4)
    if 8 * bytes_per_row > vmem_cap - 8 * _MIB:
        raise ValueError(
            f"num_classes={C} too large for the single-block-over-C design. "
            "TODO(synk): add a second grid axis over C with an online-softmax "
            "running (max, sum, dot) accumulator.")

    if tile_b is None:
        # Biggest batch tile whose double-buffered input slabs stay within the
        # per-buffer budget AND whose f32 temporaries fit under the VMEM cap.
        tile_b = per_buf_budget // max(1, C * in_itemsize)
        tile_b = min(tile_b, (vmem_cap - 4 * _MIB) // bytes_per_row)
    tile_b = min(tile_b, _round_up(B, 8))      # don't over-pad tiny batches
    tile_b = max(8, (tile_b // 8) * 8)         # sublane-aligned

    # --- partials: one per TensorCore.  Only v7x has 2 TCs; on 1-TC chips a
    #     second partial only forces extra padded tiles for no benefit. --------
    if num_partials is None:
        num_partials = 2 if (is_v7x and detected) else 1
    n_outer = max(1, int(num_partials))
    n_tiles = _round_up(max(-(-B // tile_b), n_outer), n_outer)
    n_inner = n_tiles // n_outer
    B_pad = n_tiles * tile_b

    if B_pad != B:
        # Zero-padded rows give identical (uniform) student & teacher
        # distributions -> their KL contribution is exactly 0; padding does not
        # bias the loss.
        pad = ((0, B_pad - B), (0, 0))
        logits_stu = jnp.pad(logits_stu, pad)
        logits_tch = jnp.pad(logits_tch, pad)

    # --- explicit VMEM budget: double-buffered inputs + f32 temporaries +
    #     accumulator + headroom, clamped to the generation cap. ---------------
    in_bytes = tile_b * C * (jnp.dtype(logits_stu.dtype).itemsize
                             + jnp.dtype(logits_tch.dtype).itemsize)
    vmem_est = 2 * in_bytes + n_f32_tmp * tile_b * C * 4 + tile_b * 4 + 2 * _MIB
    vmem_limit = int(min(max(vmem_est, 32 * _MIB), vmem_cap))

    # Guarantee the two partials land on both v7x TensorCores; plain PARALLEL
    # elsewhere (single TC, or detection unavailable).
    outer_sem = (pltpu.CORE_PARALLEL if (is_v7x and detected and n_outer > 1)
                 else pltpu.PARALLEL)

    kernel = functools.partial(_prob_loss_kernel, approx_recip=approx_reciprocal)

    partials = pl.pallas_call(
        kernel,
        out_shape=jax.ShapeDtypeStruct((n_outer, 8, 128), jnp.float32),
        grid_spec=pltpu.PrefetchScalarGridSpec(
            num_scalar_prefetch=0,
            grid=(n_outer, n_inner),
            in_specs=[
                pl.BlockSpec((tile_b, C), lambda o, i: (o * n_inner + i, 0)),
                pl.BlockSpec((tile_b, C), lambda o, i: (o * n_inner + i, 0)),
            ],
            # One full (8,128) tile per partial so per-core output blocks never
            # alias the same backing tile on a 2-TensorCore chip.
            out_specs=pl.BlockSpec((1, 8, 128), lambda o, i: (o, 0, 0)),
            scratch_shapes=[pltpu.VMEM((tile_b, 1), jnp.float32)],
        ),
        compiler_params=pltpu.CompilerParams(
            dimension_semantics=(outer_sem, pltpu.ARBITRARY),
            vmem_limit_bytes=vmem_limit,
        ),
    )(logits_stu, logits_tch)

    return jnp.sum(partials[:, 0, 0])


def _reference_probability_loss(logits_stu, logits_tch):
    log_p_stu = jax.nn.log_softmax(logits_stu.astype(jnp.float32), axis=-1)
    p_tch = jax.nn.softmax(logits_tch.astype(jnp.float32), axis=-1)
    log_p_tch = jax.nn.log_softmax(logits_tch.astype(jnp.float32), axis=-1)
    return jnp.sum(p_tch * (log_p_tch - log_p_stu))


if __name__ == "__main__":
    # ProbabilityLoss(batch_size, world_size) — no learnable parameters.
    batch_size = 16
    world_size = 1      # single-device path
    num_classes = 128   # lane-aligned class dimension

    key = jax.random.PRNGKey(0)
    k1, k2 = jax.random.split(key)
    logits_stu = jax.random.normal(k1, (batch_size, num_classes), dtype=jnp.float32)
    logits_tch = jax.random.normal(k2, (batch_size, num_classes), dtype=jnp.float32)

    loss = jax.block_until_ready(probability_loss(logits_stu, logits_tch))
    ref = jax.block_until_ready(_reference_probability_loss(logits_stu, logits_tch))
    assert jnp.allclose(loss, ref, rtol=1e-5, atol=1e-4), (loss, ref)

    print("KERNEL_OK")
</pallas_src>

<mosaic_0001>
module attributes {stable_mosaic.version = 11 : i64} {
  func.func @_prob_loss_kernel(%arg0: i32, %arg1: i32, %arg2: memref<16x128xf32, #tpu.memory_space<vmem>>, %arg3: memref<16x128xf32, #tpu.memory_space<vmem>>, %arg4: memref<1x8x128xf32, #tpu.memory_space<vmem>>, %arg5: memref<16x1xf32, #tpu.memory_space<vmem>>) attributes {dimension_semantics = [#tpu.dimension_semantics<parallel>, #tpu.dimension_semantics<arbitrary>], iteration_bounds = array<i64: 1, 1>, scalar_prefetch = 0 : i64, scratch_operands = 1 : i64, tpu.core_type = #tpu.core_type<tc>, window_params = [{transform_indices = @transform_0, window_bounds = array<i64: 16, 128>}, {transform_indices = @transform_1, window_bounds = array<i64: 16, 128>}, {transform_indices = @transform_2, window_bounds = array<i64: 1, 8, 128>}]} {
    %c0_i32 = arith.constant 0 : i32
    %0 = arith.cmpi eq, %arg1, %c0_i32 : i32
    %1 = arith.extui %0 : i1 to i32
    %c0_i32_0 = arith.constant 0 : i32
    %2 = arith.cmpi ne, %1, %c0_i32_0 : i32
    scf.if %2 {
      %cst_15 = arith.constant 0.000000e+00 : f32
      %32 = vector.broadcast %cst_15 : f32 to vector<16x1xf32>
      %c0_16 = arith.constant 0 : index
      %c0_17 = arith.constant 0 : index
      %33 = vector.load %arg5[%c0_16, %c0_17] : memref<16x1xf32, #tpu.memory_space<vmem>>, vector<16x1xf32>
      tpu.vector_store %arg5[%c0_16, %c0_17], %32 {strides = array<i32>} : memref<16x1xf32, #tpu.memory_space<vmem>>, vector<16x1xf32>,
    } else {
    }
    %c0 = arith.constant 0 : index
    %c0_1 = arith.constant 0 : index
    %3 = vector.load %arg2[%c0, %c0_1] : memref<16x128xf32, #tpu.memory_space<vmem>>, vector<16x128xf32>
    %c0_2 = arith.constant 0 : index
    %c0_3 = arith.constant 0 : index
    %4 = vector.load %arg3[%c0_2, %c0_3] : memref<16x128xf32, #tpu.memory_space<vmem>>, vector<16x128xf32>
    %cst = arith.constant dense<0xFF800000> : vector<16xf32>
    %5 = vector.multi_reduction <maximumf>, %3, %cst [1] : vector<16x128xf32> to vector<16xf32>
    %6 = vector.shape_cast %5 : vector<16xf32> to vector<16x1xf32>
    %7 = vector.broadcast %6 : vector<16x1xf32> to vector<16x128xf32>
    %8 = arith.subf %3, %7 : vector<16x128xf32>
    %cst_4 = arith.constant dense<0xFF800000> : vector<16xf32>
    %9 = vector.multi_reduction <maximumf>, %4, %cst_4 [1] : vector<16x128xf32> to vector<16xf32>
    %10 = vector.shape_cast %9 : vector<16xf32> to vector<16x1xf32>
    %11 = vector.broadcast %10 : vector<16x1xf32> to vector<16x128xf32>
    %12 = arith.subf %4, %11 : vector<16x128xf32>
    %13 = math.exp %12 : vector<16x128xf32>
    %14 = math.exp %8 : vector<16x128xf32>
    %cst_5 = arith.constant 1.000000e+00 : f32
    %15 = vector.broadcast %cst_5 : f32 to vector<128x1xf32>
    %cst_6 = arith.constant dense<0.000000e+00> : vector<16x1xf32>
    %16 = tpu.matmul %13, %15, %cst_6 {dimension_numbers = #tpu.dot_dimension_numbers<[1], [0], [0], [1], [0, 0, 1, 1], [], []>} : vector<16x128xf32>, vector<128x1xf32>, vector<16x1xf32> -> vector<16x1xf32>
    %cst_7 = arith.constant dense<0.000000e+00> : vector<16x1xf32>
    %17 = tpu.matmul %14, %15, %cst_7 {dimension_numbers = #tpu.dot_dimension_numbers<[1], [0], [0], [1], [0, 0, 1, 1], [], []>} : vector<16x128xf32>, vector<128x1xf32>, vector<16x1xf32> -> vector<16x1xf32>
    %18 = arith.subf %12, %8 : vector<16x128xf32>
    %19 = arith.mulf %13, %18 : vector<16x128xf32>
    %cst_8 = arith.constant dense<0.000000e+00> : vector<16x1xf32>
    %20 = tpu.matmul %19, %15, %cst_8 {dimension_numbers = #tpu.dot_dimension_numbers<[1], [0], [0], [1], [0, 0, 1, 1], [], []>} : vector<16x128xf32>, vector<128x1xf32>, vector<16x1xf32> -> vector<16x1xf32>
    %21 = tpu.reciprocal %16 : vector<16x1xf32> -> vector<16x1xf32>
    %22 = arith.mulf %20, %21 : vector<16x1xf32>
    %23 = arith.mulf %17, %21 : vector<16x1xf32>
    %24 = math.log %23 : vector<16x1xf32>
    %25 = arith.addf %22, %24 : vector<16x1xf32>
    %c0_9 = arith.constant 0 : index
    %c0_10 = arith.constant 0 : index
    %26 = vector.load %arg5[%c0_9, %c0_10] : memref<16x1xf32, #tpu.memory_space<vmem>>, vector<16x1xf32>
    %27 = arith.addf %26, %25 : vector<16x1xf32>
    %c0_11 = arith.constant 0 : index
    %c0_12 = arith.constant 0 : index
    %28 = vector.load %arg5[%c0_11, %c0_12] : memref<16x1xf32, #tpu.memory_space<vmem>>, vector<16x1xf32>
    tpu.vector_store %arg5[%c0_11, %c0_12], %27 {strides = array<i32>} : memref<16x1xf32, #tpu.memory_space<vmem>>, vector<16x1xf32>,
    %c0_i32_13 = arith.constant 0 : i32
    %29 = arith.cmpi eq, %arg1, %c0_i32_13 : i32
    %30 = arith.extui %29 : i1 to i32
    %c0_i32_14 = arith.constant 0 : i32
    %31 = arith.cmpi ne, %30, %c0_i32_14 : i32
    scf.if %31 {
      %c0_15 = arith.constant 0 : index
      %c0_16 = arith.constant 0 : index
      %32 = vector.load %arg5[%c0_15, %c0_16] : memref<16x1xf32, #tpu.memory_space<vmem>>, vector<16x1xf32>
      %33 = vector.shape_cast %32 : vector<16x1xf32> to vector<1x16x1xf32>
      %cst_17 = arith.constant dense<0.000000e+00> : vector<1xf32>
      %34 = vector.multi_reduction <add>, %33, %cst_17 [1, 2] : vector<1x16x1xf32> to vector<1xf32>
      %35 = vector.shape_cast %34 : vector<1xf32> to vector<1x1x1xf32>
      %36 = vector.extract %35[0, 0, 0] : f32 from vector<1x1x1xf32>
      %37 = vector.broadcast %36 : f32 to vector<1x8x128xf32>
      %c0_18 = arith.constant 0 : index
      %c0_19 = arith.constant 0 : index
      %c0_20 = arith.constant 0 : index
      %38 = vector.load %arg4[%c0_18, %c0_19, %c0_20] : memref<1x8x128xf32, #tpu.memory_space<vmem>>, vector<1x8x128xf32>
      tpu.vector_store %arg4[%c0_18, %c0_19, %c0_20], %37 {strides = array<i32>} : memref<1x8x128xf32, #tpu.memory_space<vmem>>, vector<1x8x128xf32>,
    } else {
    }
    return
  }
  func.func @transform_0(%arg0: i32, %arg1: i32) -> (i32, i32) {
    %c1_i32 = arith.constant 1 : i32
    %0 = arith.muli %arg0, %c1_i32 : i32
    %1 = arith.addi %0, %arg1 : i32
    %c0_i32 = arith.constant 0 : i32
    %c0_i32_0 = arith.constant 0 : i32
    return %1, %c0_i32 : i32, i32
  }
  func.func @transform_1(%arg0: i32, %arg1: i32) -> (i32, i32) {
    %c1_i32 = arith.constant 1 : i32
    %0 = arith.muli %arg0, %c1_i32 : i32
    %1 = arith.addi %0, %arg1 : i32
    %c0_i32 = arith.constant 0 : i32
    %c0_i32_0 = arith.constant 0 : i32
    return %1, %c0_i32 : i32, i32
  }
  func.func @transform_2(%arg0: i32, %arg1: i32) -> (i32, i32, i32) {
    %c0_i32 = arith.constant 0 : i32
    %c0_i32_0 = arith.constant 0 : i32
    %c0_i32_1 = arith.constant 0 : i32
    return %arg0, %c0_i32, %c0_i32_0 : i32, i32, i32
  }
}

</mosaic_0001>

<bundles_post_ra>
// kernel: tpu_custom_call.1
= control target key start
LH: loop header
LB: loop body
LE: loop exit
PB: predicated region body
PF: predicated region fallthrough
CT: control target
= control target key end

     0   :  { %7 = vsyncpa [#allocation4], 0  ;;  %s462_s0 = inlined_call_operand.hbm [shape: f32[16,128], index: 0, kind: input, shape index: {}]   ;;  %s463_s1 = inlined_call_operand.hbm [shape: f32[16,128], index: 1, kind: input, shape index: {}]   ;;  %s464_s2 = inlined_call_operand.hbm [shape: f32[1,8,128], index: 2, kind: output, shape index: {}]  }
   0x1   :  { %8 = vsyncpa [#allocation7], 0 }
   0x2   :  { %9 = vsyncpa [#allocation5], 0  ;;  %s18_s11 = sshll.u32 %s462_s0, 4  ;;  %s361_s12 = smov [#allocation3]   ;;  %s19_s11 = int_to_ptr.hbm [resolvable:$true] %s18_s11 }
   0x3   :  { %s20_s13 = sshll.u32 %s361_s12, 4  ;;  %s35_s16 = sshll.u32 %s463_s1, 4  ;;  %s21_s13 = int_to_ptr.vmem [resolvable:$true] %s20_s13  ;;  %s36_s16 = int_to_ptr.hbm [resolvable:$true] %s35_s16 }
   0x4   :  { %s362_s17 = smov 128   ;;  %s363_s18 = smov 8  }
   0x5   :  { %26 = dma.hbm_to_vmem [thread:$0]  %s19_s11, 256, %s21_s13, [#allocation4], %s362_s17, %s362_s17, %s363_s18  }
   0x6   :  { %s364_s19 = smov [#allocation6]  }
   0x7   :  { %s37_s20 = sshll.u32 %s364_s19, 4  ;;  %s38_s20 = int_to_ptr.vmem [resolvable:$true] %s37_s20 }
   0x8   :  { %43 = dma.hbm_to_vmem [thread:$0]  %s36_s16, 256, %s38_s20, [#allocation7], %s362_s17, %s362_s17, %s363_s18  }
   0x9   :  { %355 = dma.done.wait [#allocation4], 256  }
   0xa   :  { %356 = vsyncadd [#allocation4], 4294967040 }
   0xb   :  { %357 = dma.done.wait [#allocation7], 256  }
   0xc   :  { %358 = vsyncadd [#allocation7], 4294967040  ;;  %v365_v0 = vmov 1.0   ;;  %v66_v1 = vld [vmem:[#allocation6 + $0x8] sm:$0xff]  ;;  %v63_v2 = vld [vmem:[#allocation3] sm:$0xff]  ;;  %vm60_vm0 = vcmask 7168  }
   0xd   :  { %242 = vmatpush.msra.mxu3 %v365_v0  ;;  %87 = vmatpush.msra.mxu0 %v365_v0  ;;  %v65_v3 = vld [vmem:[#allocation6] sm:$0xff]  ;;  %v64_v4 = vld [vmem:[#allocation3 + $0x8] sm:$0xff]  ;;  %v366_v25 = vmov 0.0   ;;  %s367_s0 = smov [#allocation8]   ;;  %s231_s23 = sshll.u32 %s464_s2, 4  ;;  %s232_s23 = int_to_ptr.hbm [resolvable:$true] %s231_s23 }
   0xe   :  { %137 = vmatpush.msra.mxu2 %v365_v0  ;;  %110 = vmatpush.msra.mxu1 %v365_v0  ;;  %61 = vst.msk [vmem:[#allocation2] sm:$0xff] %vm60_vm0, %v366_v25  ;;  %s229_s1 = sshll.u32 %s367_s0, 4  ;;  %s230_s1 = int_to_ptr.vmem [resolvable:$true] %s229_s1 }
   0xf   :  { %243 = vmatpush.msra.mxu3 %v365_v0  ;;  %88 = vmatpush.msra.mxu0 %v365_v0  ;;  %62 = vst.msk [vmem:[#allocation2 + $0x8] sm:$0xff] %vm60_vm0, %v366_v25 }
  0x10   :  { %138 = vmatpush.msra.mxu2 %v365_v0  ;;  %111 = vmatpush.msra.mxu1 %v365_v0 }
  0x11   :  { %244 = vmatpush.msra.mxu3 %v365_v0  ;;  %89 = vmatpush.msra.mxu0 %v365_v0 }
  0x12   :  { %139 = vmatpush.msra.mxu2 %v365_v0  ;;  %112 = vmatpush.msra.mxu1 %v365_v0 }
  0x13   :  { %245 = vmatpush.msra.mxu3 %v365_v0  ;;  %90 = vmatpush.msra.mxu0 %v365_v0 }
  0x14   :  { %75 = vmax.xlane.f32.xlu0 %v66_v1  ;;  %67 = vmax.xlane.f32.xlu1 %v63_v2 }
  0x15   :  { %246 = vmatpush.msra.mxu3 %v365_v0  ;;  %91 = vmatpush.msra.mxu0 %v365_v0  ;;  %v198_v62 = vld [vmem:[#allocation2] sm:$0xff] }
  0x16   :  { %140 = vmatpush.msra.mxu2 %v365_v0  ;;  %113 = vmatpush.msra.mxu1 %v365_v0  ;;  %v199_v58 = vld [vmem:[#allocation2 + $0x8] sm:$0xff] }
  0x17   :  { %247 = vmatpush.msra.mxu3 %v365_v0  ;;  %92 = vmatpush.msra.mxu0 %v365_v0 }
  0x18   :  { %141 = vmatpush.msra.mxu2 %v365_v0  ;;  %114 = vmatpush.msra.mxu1 %v365_v0 }
  0x19   :  { %248 = vmatpush.msra.mxu3 %v365_v0  ;;  %93 = vmatpush.msra.mxu0 %v365_v0 }
  0x1a   :  { %142 = vmatpush.msra.mxu2 %v365_v0  ;;  %115 = vmatpush.msra.mxu1 %v365_v0 }
  0x1b   :  { %249 = vmatpush.msra.mxu3 %v365_v0  ;;  %94 = vmatpush.msra.mxu0 %v365_v0 }
  0x1c   :  { %73 = vmax.xlane.f32.xlu0 %v65_v3  ;;  %69 = vmax.xlane.f32.xlu1 %v64_v4 }
  0x1d   :  { %250 = vmatpush.msra.mxu3 %v365_v0  ;;  %143 = vmatpush.msra.mxu2 %v365_v0 }
  0x1e   :  { %95 = vmatpush.msra.mxu0 %v365_v0  ;;  %116 = vmatpush.msra.mxu1 %v365_v0 }
  0x1f   :  { %251 = vmatpush.msra.mxu3 %v365_v0  ;;  %144 = vmatpush.msra.mxu2 %v365_v0 }
  0x20   :  { %96 = vmatpush.msra.mxu0 %v365_v0  ;;  %117 = vmatpush.msra.mxu1 %v365_v0 }
  0x21   :  { %252 = vmatpush.msra.mxu3 %v365_v0  ;;  %145 = vmatpush.msra.mxu2 %v365_v0 }
  0x22   :  { %97 = vmatpush.msra.mxu0 %v365_v0  ;;  %118 = vmatpush.msra.mxu1 %v365_v0 }
  0x23   :  { %253 = vmatpush.msra.mxu3 %v365_v0  ;;  %146 = vmatpush.msra.mxu2 %v365_v0 }
  0x24   :  { %98 = vmatpush.msra.mxu0 %v365_v0  ;;  %119 = vmatpush.msra.mxu1 %v365_v0 }
  0x25   :  { %254 = vmatpush.msra.mxu3 %v365_v0  ;;  %147 = vmatpush.msra.mxu2 %v365_v0 }
  0x26   :  { %99 = vmatpush.msra.mxu0 %v365_v0  ;;  %120 = vmatpush.msra.mxu1 %v365_v0 }
  0x27   :  { %255 = vmatpush.msra.mxu3 %v365_v0  ;;  %148 = vmatpush.msra.mxu2 %v365_v0 }
  0x28   :  { %100 = vmatpush.msra.mxu0 %v365_v0  ;;  %121 = vmatpush.msra.mxu1 %v365_v0 }
  0x29   :  { %256 = vmatpush.msra.mxu3 %v365_v0  ;;  %149 = vmatpush.msra.mxu2 %v365_v0 }
  0x2a   :  { %101 = vmatpush.msra.mxu0 %v365_v0  ;;  %122 = vmatpush.msra.mxu1 %v365_v0 }
  0x2b   :  { %257 = vmatpush.msra.mxu3 %v365_v0  ;;  %150 = vmatpush.msra.mxu2 %v365_v0 }
  0x2c   :  { %102 = vmatpush.msra.mxu0 %v365_v0  ;;  %123 = vmatpush.msra.mxu1 %v365_v0 }
  0x2d   :  { %151 = vmatpush.msra.mxu2 %v365_v0 }
  0x2e   :  { %124 = vmatpush.msra.mxu1 %v365_v0 }
  0x2f   :  { %152 = vmatpush.msra.mxu2 %v365_v0 }
  0x30   :  { %125 = vmatpush.msra.mxu1 %v365_v0 }
  0x87   :  { %v76_v5 = vpop.xlane.xlu0 %75  ;;  %v68_v6 = vpop.xlane.xlu1 %67 }
  0x88   :  { %v78_v7 = vsub.f32 %v66_v1, %v76_v5  ;;  %v71_v8 = vsub.f32 %v63_v2, %v68_v6 }
  0x8a   :  { %v81_v9 = vmul.f32 1.442695, %v78_v7  ;;  %v83_v10 = vmul.f32 1.442695, %v71_v8 }
  0x8c   :  { %267 = vpow2.f32 %v81_v9 }
  0x8d   :  { %269 = vpow2.f32 %v83_v10 }
  0x8f   :  { %v74_v11 = vpop.xlane.xlu0 %73  ;;  %v70_v12 = vpop.xlane.xlu1 %69 }
  0x90   :  { %v77_v13 = vsub.f32 %v65_v3, %v74_v11  ;;  %v72_v14 = vsub.f32 %v64_v4, %v70_v12 }
  0x92   :  { %v268_v15 = vpop.eup %267  ;;  %v79_v16 = vmul.f32 1.442695, %v77_v13  ;;  %v85_v17 = vmul.f32 1.442695, %v72_v14  ;;  %v133_v19 = vsub.f32 %v77_v13, %v71_v8  ;;  %v134_v23 = vsub.f32 %v78_v7, %v72_v14 }
  0x93   :  { %v270_v18 = vpop.eup %269  ;;  %106 = vmatmul.f32.vlgmr.msra.gmra.mxu3 %v268_v15 }
  0x94   :  { %271 = vpow2.f32 %v79_v16  ;;  %126 = vmatmul.f32.vlgmr.msra.gmra.mxu1 %v270_v18  ;;  %v136_v24 = vmul.f32 %v268_v15, %v134_v23 }
  0x95   :  { %273 = vpow2.f32 %v85_v17 }
  0x9a   :  { %v272_v20 = vpop.eup %271 }
  0x9b   :  { %v274_v21 = vpop.eup %273  ;;  %103 = vmatmul.f32.vlgmr.msra.gmra.mxu0 %v272_v20  ;;  %v135_v22 = vmul.f32 %v272_v20, %v133_v19 }
  0x9c   :  { %129 = vmatmul.f32.gmra.mxu1 %v274_v21 }
  0x9d   :  { %153 = vmatmul.f32.vlgmr.msra.gmra.mxu2 %v135_v22 }
  0xa5   :  { %156 = vmatmul.f32.gmra.mxu2 %v136_v24 }
 0x111   :  { %v127_v28 = vpop.f32.mrf.mxu1 }
 0x116   :  { %v107_v26 = vpop.f32.mrf.mxu3 }
 0x117   :  { %275 = vrcp.f32 %v107_v26  ;;  %v185_v34 = vand.u32 2147483648, %v107_v26  ;;  %v183_v37 = vand.u32 2147483647, %v107_v26  ;;  %vm179_vm2 = vweird.f32 %v107_v26 }
 0x118   :  { %v104_v27 = vpop.f32.mrf.mxu0 }
 0x119   :  { %277 = vrcp.f32 %v104_v27  ;;  %v171_v38 = vand.u32 2147483648, %v104_v27  ;;  %v169_v40 = vand.u32 2147483647, %v104_v27  ;;  %v130_v43 = vpop.f32.mrf.mxu1  ;;  %v186_v44 = vor.u32 1.1754944e-38, %v185_v34 }
 0x11a   :  { %vm165_vm5 = vweird.f32 %v104_v27  ;;  %vm184_vm6 = vcmp.eq.f32.partialorder %v183_v37, 8.507059e+37 }
 0x11b   :  { %v172_v47 = vor.u32 1.1754944e-38, %v171_v38  ;;  %vm170_vm8 = vcmp.eq.f32.partialorder %v169_v40, 8.507059e+37 }
 0x11d   :  { %v276_v29 = vpop.eup %275 }
 0x11e   :  { %v175_v30 = vmul.f32 %v276_v29, %v107_v26  ;;  %vm180_vm1 = vweird.f32 %v276_v29 }
 0x11f   :  { %v278_v31 = vpop.eup %277  ;;  %vm181_vm4 = vmor %vm179_vm2, %vm180_vm1 }
 0x120   :  { %v176_v32 = vsub.f32 1.0, %v175_v30  ;;  %v161_v33 = vmul.f32 %v278_v31, %v104_v27  ;;  %vm166_vm3 = vweird.f32 %v278_v31  ;;  %v154_v41 = vpop.f32.mrf.mxu2 }
 0x121   :  { %vm167_vm7 = vmor %vm165_vm5, %vm166_vm3 }
 0x122   :  { %v177_v35 = vmul.f32 %v276_v29, %v176_v32  ;;  %v162_v36 = vsub.f32 1.0, %v161_v33 }
 0x124   :  { %v163_v39 = vmul.f32 %v278_v31, %v162_v36  ;;  %v178_v42 = vadd.f32 %v276_v29, %v177_v35 }
 0x126   :  { %v164_v45 = vadd.f32 %v278_v31, %v163_v39  ;;  %v182_v46 = vsel %vm181_vm4, %v276_v29, %v178_v42 }
 0x127   :  { %v187_v48 = vsel %vm184_vm6, %v186_v44, %v182_v46 }
 0x128   :  { %v168_v49 = vsel %vm167_vm7, %v278_v31, %v164_v45  ;;  %v191_v50 = vmul.f32 %v187_v48, %v130_v43  ;;  %v157_v53 = vpop.f32.mrf.mxu2 }
 0x129   :  { %v173_v51 = vsel %vm170_vm8, %v172_v47, %v168_v49  ;;  %v189_v56 = vmul.f32 %v187_v48, %v157_v53 }
 0x12a   :  { %v190_v52 = vmul.f32 %v173_v51, %v127_v28  ;;  %279 = vlog2.f32 %v191_v50  ;;  %v188_v60 = vmul.f32 %v173_v51, %v154_v41 }
 0x12c   :  { %281 = vlog2.f32 %v190_v52 }
 0x130   :  { %v280_v54 = vpop.eup %279 }
 0x131   :  { %v195_v55 = vmul.f32 0.6931472, %v280_v54 }
 0x132   :  { %v282_v57 = vpop.eup %281 }
 0x133   :  { %v193_v59 = vmul.f32 0.6931472, %v282_v57  ;;  %v197_v61 = vadd.f32 %v195_v55, %v189_v56 }
 0x135   :  { %v196_v63 = vadd.f32 %v193_v59, %v188_v60  ;;  %v201_v0 = vadd.f32 %v199_v58, %v197_v61 }
 0x137   :  { %v200_v1 = vadd.f32 %v198_v62, %v196_v63  ;;  %204 = vst.msk [vmem:[#allocation2 + $0x8] sm:$0xff] %vm60_vm0, %v201_v0 }
 0x139   :  { %203 = vst.msk [vmem:[#allocation2] sm:$0xff] %vm60_vm0, %v200_v1 }
 0x13e   :  { %v209_v2 = vld [vmem:[#allocation2 + $0x8] sm:$0xff] }
 0x13f   :  { %v211_v5 = vsel %vm60_vm0, %v209_v2, 0.0 }
 0x140   :  { %v208_v3 = vld [vmem:[#allocation2] sm:$0xff] }
 0x141   :  { %v210_v4 = vsel %vm60_vm0, %v208_v3, 0.0 }
 0x142   :  { %v212_v6 = vadd.f32 %v211_v5, %v210_v4 }
 0x144   :  { %213 = vadd.xlane.f32.xlu2 %v212_v6 }
 0x1b7   :  { %v214_v7 = vpop.xlane.xlu2 %213 }
 0x1b8   :  { %v215_v8 = vrot.slane %v214_v7, 4 }
 0x1ba   :  { %v216_v9 = vadd.f32 %v215_v8, %v214_v7 }
 0x1bc   :  { %v217_v10 = vrot.slane %v216_v9, 2 }
 0x1be   :  { %v218_v11 = vadd.f32 %v217_v10, %v216_v9 }
 0x1c0   :  { %v219_v12 = vrot.slane %v218_v11, 1 }
 0x1c2   :  { %v220_v13 = vadd.f32 %v219_v12, %v218_v11 }
 0x1c4   :  { %258 = vpush %v220_v13 }
 0x1f5   :  { %s259_s24 = spop %258 }
 0x1f6   :  { %v222_v14 = vstv %s259_s24 }
 0x1f7   :  { %223 = vst [vmem:[#allocation8] sm:$0xff] %v222_v14 }
 0x1f8   :  { %234 = dma.vmem_to_hbm [thread:$0]  %s230_s1, 128, %s232_s23, [#allocation5]  }
 0x1f9   :  { %359 = dma.done.wait [#allocation5], 128  }
 0x1fa   :  { %360 = vsyncadd [#allocation5], 4294967168 }
 0x1fb   :  { %239 = vsyncpa [#allocation4], 1 }
 0x1fc   :  { %240 = vsyncpa [#allocation7], 1 }
 0x1fd   :  { %241 = vsyncpa [#allocation5], 1 }

</bundles_post_ra>
